<compile_context>
chip_gen: v7x
topology: tpu7x:2x2x1
jax: 0.10.0
libtpu: 0.0.40
codegen_flags: <defaults>
</compile_context>

<pallas_src>
import math
import jax
import jax.numpy as jnp
from jax import lax
from jax.experimental import pallas as pl
from jax.experimental.pallas import tpu as pltpu


# ----------------------------- Linear kernel --------------------------------
def _linear_kernel(x_ref, w_ref, b_ref, o_ref):
    # y = x @ w + b   (w stored as (d_in, d_out), i.e. already transposed)
    o_ref[...] = (
        jnp.dot(x_ref[...], w_ref[...], preferred_element_type=jnp.float32)
        + b_ref[...]
    ).astype(o_ref.dtype)


def pallas_linear(x, w, b, *, max_tile_m=512):
    """x: (M, Din) f32, w: (Din, Dout) f32, b: (1, Dout) f32 -> (M, Dout) f32.

    Tiled over M so the activation is never fully resident in VMEM and row
    tiles are double-buffered; the weight/bias blocks are grid-invariant so
    they stay resident in VMEM across steps.
    """
    M, Din = x.shape
    Dout = w.shape[1]
    tm = M
    for cand in (max_tile_m, 256, 128, 64, 32, 16, 8):
        if cand <= M and M % cand == 0:
            tm = cand
            break
    return pl.pallas_call(
        _linear_kernel,
        out_shape=jax.ShapeDtypeStruct((M, Dout), jnp.float32),
        grid_spec=pltpu.PrefetchScalarGridSpec(
            num_scalar_prefetch=0,
            grid=(M // tm,),
            in_specs=[
                pl.BlockSpec((tm, Din), lambda i: (i, 0)),
                pl.BlockSpec((Din, Dout), lambda i: (0, 0)),
                pl.BlockSpec((1, Dout), lambda i: (0, 0)),
            ],
            out_specs=pl.BlockSpec((tm, Dout), lambda i: (i, 0)),
        ),
        compiler_params=pltpu.CompilerParams(
            dimension_semantics=("parallel",)
        ),
    )(x, w, b)


# ------------------------- Time-attention kernel -----------------------------
def _time_attn_kernel(q_ref, k_ref, v_ref, t_ref, o_ref, qk_ref):
    # q_ref/k_ref/v_ref/t_ref: (h, S, d_k); o_ref: (S, h*d_k); qk_ref: (h, S, S) f32
    t_idx = pl.program_id(1)
    h, S, d_k = q_ref.shape
    scale = 1.0 / math.sqrt(d_k)            # single pre-scale instead of two divides

    q = q_ref[...].astype(jnp.float32) * scale          # (h, S, d_k)

    @pl.when(t_idx == 0)
    def _():
        # q @ k^T does not depend on the time step: compute once per batch
        # and cache in VMEM; also zero the resident output accumulator.
        qk_ref[...] = lax.dot_general(
            q, k_ref[...].astype(jnp.float32),
            dimension_numbers=(((2,), (2,)), ((0,), (0,))),   # contract d_k, batch h
            preferred_element_type=jnp.float32,
        )
        o_ref[...] = jnp.zeros_like(o_ref)

    # q @ t^T (contract last dims directly -- no transpose materialized)
    qt = lax.dot_general(
        q, t_ref[...].astype(jnp.float32),
        dimension_numbers=(((2,), (2,)), ((0,), (0,))),
        preferred_element_type=jnp.float32,
    )                                                    # (h, S, S)

    scores = qk_ref[...] + qt
    scores = scores - jnp.max(scores, axis=-1, keepdims=True)
    e = jnp.exp(scores)
    # softmax normalization on the EUP (approx reciprocal) instead of a VALU divide
    p = e * pl.reciprocal(jnp.sum(e, axis=-1, keepdims=True), approx=True)

    x = lax.dot_general(
        p, v_ref[...].astype(jnp.float32),
        dimension_numbers=(((2,), (1,)), ((0,), (0,))),      # (h, S, S) @ (h, S, d_k)
        preferred_element_type=jnp.float32,
    )                                                    # (h, S, d_k)

    # Accumulate heads into the lane-dense (S, h*d_k) resident output block.
    # h is small & static -> unrolled; each store is a static lane slice.
    for head in range(h):
        o_ref[:, head * d_k:(head + 1) * d_k] += x[head]


def time_attention(q, k, v, t_stack):
    """q,k,v: (B, h, S, d_k); t_stack: (T, B, h, S, d_k) -> (B, S, h*d_k),
    summed over the T ('add') axis."""
    B, h, S, d_k = q.shape
    T = t_stack.shape[0]
    return pl.pallas_call(
        _time_attn_kernel,
        out_shape=jax.ShapeDtypeStruct((B, S, h * d_k), jnp.float32),
        grid_spec=pltpu.PrefetchScalarGridSpec(
            num_scalar_prefetch=0,
            grid=(B, T),                      # T innermost (reduction / "add" axis)
            in_specs=[
                pl.BlockSpec((None, h, S, d_k), lambda b, t: (b, 0, 0, 0)),
                pl.BlockSpec((None, h, S, d_k), lambda b, t: (b, 0, 0, 0)),
                pl.BlockSpec((None, h, S, d_k), lambda b, t: (b, 0, 0, 0)),
                pl.BlockSpec((None, None, h, S, d_k), lambda b, t: (t, b, 0, 0, 0)),
            ],
            out_specs=pl.BlockSpec((None, S, h * d_k), lambda b, t: (b, 0, 0)),
            scratch_shapes=[pltpu.VMEM((h, S, S), jnp.float32)],  # cached q@k^T
        ),
        compiler_params=pltpu.CompilerParams(
            dimension_semantics=("parallel", "arbitrary")
        ),
    )(q, k, v, t_stack)


# ------------------------------ Module wrapper -------------------------------
def init_params(key, d_model):
    """Deterministic nn.Linear-style init for the 5 projections."""
    names = ["q", "k", "v", "t", "o"]
    params = {}
    bound = 1.0 / math.sqrt(d_model)
    keys = jax.random.split(key, 2 * len(names))
    for i, n in enumerate(names):
        params["w" + n] = jax.random.uniform(
            keys[2 * i], (d_model, d_model), jnp.float32, -bound, bound
        )
        params["b" + n] = jax.random.uniform(
            keys[2 * i + 1], (1, d_model), jnp.float32, -bound, bound
        )
    return params


def multi_headed_time_attention(query, key, value, times, params, h):
    B, S, d_model = query.shape
    d_k = d_model // h
    T = len(times)

    q = pallas_linear(query.reshape(B * S, d_model), params["wq"], params["bq"])
    k = pallas_linear(key.reshape(B * S, d_model), params["wk"], params["bk"])
    v = pallas_linear(value.reshape(B * S, d_model), params["wv"], params["bv"])
    # all T time projections in ONE matmul (no per-t launches / weight re-fetch)
    t_all = jnp.stack(times, axis=0).reshape(T * B * S, d_model)
    t_proj = pallas_linear(t_all, params["wt"], params["bt"])

    def split_heads(y, *lead):
        # (..., S, d_model) -> (..., h, S, d_k)
        y = y.reshape(*lead, S, h, d_k)
        n = len(lead)
        perm = tuple(range(n)) + (n + 1, n, n + 2)
        return y.transpose(perm)

    qh = split_heads(q, B)              # (B, h, S, d_k)
    kh = split_heads(k, B)
    vh = split_heads(v, B)
    th = split_heads(t_proj, T, B)      # (T, B, h, S, d_k)

    x = time_attention(qh, kh, vh, th)  # (B, S, d_model), summed over times
    out = pallas_linear(x.reshape(B * S, d_model), params["wo"], params["bo"])
    return out.reshape(B, S, d_model)


# ------------------------------ Pure-JAX reference ---------------------------
def reference(query, key, value, times, params, h):
    B, S, d_model = query.shape
    d_k = d_model // h

    def lin(x, w, b):
        return x @ w + b

    def heads(x):
        return x.reshape(B, S, h, d_k).transpose(0, 2, 1, 3)  # (B,h,S,d_k)

    q = heads(lin(query, params["wq"], params["bq"]))
    k = heads(lin(key, params["wk"], params["bk"]))
    v = heads(lin(value, params["wv"], params["bv"]))
    x_concat = None
    for t in times:
        tt = heads(lin(t, params["wt"], params["bt"]))
        qt = jnp.einsum("bhqd,bhkd->bhqk", q, tt) / math.sqrt(d_k)
        qk = jnp.einsum("bhqd,bhkd->bhqk", q, k) / math.sqrt(d_k)
        p = jax.nn.softmax(qt + qk, axis=-1)
        x = jnp.einsum("bhqk,bhkd->bhqd", p, v)
        x_concat = x if x_concat is None else x_concat + x
    x_concat = x_concat.transpose(0, 2, 1, 3).reshape(B, S, d_model)
    return lin(x_concat, params["wo"], params["bo"])


# ----------------------------------- Main ------------------------------------
if __name__ == "__main__":
    B, S, d_model, h = 2, 8, 32, 4
    n_times = 2

    root = jax.random.PRNGKey(0)
    kp, kq, kk, kv, *kt = jax.random.split(root, 4 + n_times)
    params = init_params(kp, d_model)
    query = jax.random.normal(kq, (B, S, d_model), jnp.float32)
    key_ = jax.random.normal(kk, (B, S, d_model), jnp.float32)
    value = jax.random.normal(kv, (B, S, d_model), jnp.float32)
    times = [jax.random.normal(kt[i], (B, S, d_model), jnp.float32)
             for i in range(n_times)]

    out = multi_headed_time_attention(query, key_, value, times, params, h)
    out = jax.block_until_ready(out)

    ref = reference(query, key_, value, times, params, h)
    assert out.shape == (B, S, d_model)
    err = float(jnp.max(jnp.abs(out - ref)))
    # tolerance accounts for the approximate (EUP) reciprocal in the softmax
    assert jnp.allclose(out, ref, rtol=5e-3, atol=5e-3), err
    print("KERNEL_OK")
</pallas_src>

<mosaic_0001>
module attributes {stable_mosaic.version = 11 : i64} {
  func.func @_linear_kernel(%arg0: i32, %arg1: memref<16x32xf32, #tpu.memory_space<vmem>>, %arg2: memref<32x32xf32, #tpu.memory_space<vmem>>, %arg3: memref<1x32xf32, #tpu.memory_space<vmem>>, %arg4: memref<16x32xf32, #tpu.memory_space<vmem>>) attributes {dimension_semantics = [#tpu.dimension_semantics<parallel>], iteration_bounds = array<i64: 1>, scalar_prefetch = 0 : i64, scratch_operands = 0 : i64, tpu.core_type = #tpu.core_type<tc>, window_params = [{transform_indices = @transform_0, window_bounds = array<i64: 16, 32>}, {pipeline_mode = #tpu.pipeline_mode<synchronous>, transform_indices = @transform_1, window_bounds = array<i64: 32, 32>}, {pipeline_mode = #tpu.pipeline_mode<synchronous>, transform_indices = @transform_2, window_bounds = array<i64: 1, 32>}, {transform_indices = @transform_3, window_bounds = array<i64: 16, 32>}]} {
    %c0 = arith.constant 0 : index
    %c0_0 = arith.constant 0 : index
    %0 = vector.load %arg1[%c0, %c0_0] : memref<16x32xf32, #tpu.memory_space<vmem>>, vector<16x32xf32>
    %c0_1 = arith.constant 0 : index
    %c0_2 = arith.constant 0 : index
    %1 = vector.load %arg2[%c0_1, %c0_2] : memref<32x32xf32, #tpu.memory_space<vmem>>, vector<32x32xf32>
    %cst = arith.constant dense<0.000000e+00> : vector<16x32xf32>
    %2 = tpu.matmul %0, %1, %cst {dimension_numbers = #tpu.dot_dimension_numbers<[1], [0], [0], [1], [0, 0, 1, 1], [], []>} : vector<16x32xf32>, vector<32x32xf32>, vector<16x32xf32> -> vector<16x32xf32>
    %c0_3 = arith.constant 0 : index
    %c0_4 = arith.constant 0 : index
    %3 = vector.load %arg3[%c0_3, %c0_4] : memref<1x32xf32, #tpu.memory_space<vmem>>, vector<1x32xf32>
    %4 = vector.broadcast %3 : vector<1x32xf32> to vector<16x32xf32>
    %5 = arith.addf %2, %4 : vector<16x32xf32>
    %c0_5 = arith.constant 0 : index
    %c0_6 = arith.constant 0 : index
    %6 = vector.load %arg4[%c0_5, %c0_6] : memref<16x32xf32, #tpu.memory_space<vmem>>, vector<16x32xf32>
    tpu.vector_store %arg4[%c0_5, %c0_6], %5 {strides = array<i32>} : memref<16x32xf32, #tpu.memory_space<vmem>>, vector<16x32xf32>,
    return
  }
  func.func @transform_0(%arg0: i32) -> (i32, i32) {
    %c0_i32 = arith.constant 0 : i32
    %c0_i32_0 = arith.constant 0 : i32
    return %arg0, %c0_i32 : i32, i32
  }
  func.func @transform_1(%arg0: i32) -> (i32, i32) {
    %c0_i32 = arith.constant 0 : i32
    %c0_i32_0 = arith.constant 0 : i32
    %c0_i32_1 = arith.constant 0 : i32
    return %c0_i32, %c0_i32_0 : i32, i32
  }
  func.func @transform_2(%arg0: i32) -> (i32, i32) {
    %c0_i32 = arith.constant 0 : i32
    %c0_i32_0 = arith.constant 0 : i32
    %c0_i32_1 = arith.constant 0 : i32
    return %c0_i32, %c0_i32_0 : i32, i32
  }
  func.func @transform_3(%arg0: i32) -> (i32, i32) {
    %c0_i32 = arith.constant 0 : i32
    %c0_i32_0 = arith.constant 0 : i32
    return %arg0, %c0_i32 : i32, i32
  }
}

</mosaic_0001>

<bundles_post_ra>
// kernel: tpu_custom_call.1
= control target key start
LH: loop header
LB: loop body
LE: loop exit
PB: predicated region body
PF: predicated region fallthrough
CT: control target
= control target key end

     0   :  { %8 = vsyncpa [#allocation3], 0  ;;  %s340_s0 = inlined_call_operand.hbm [shape: f32[16,32], index: 0, kind: input, shape index: {}]   ;;  %s341_s1 = inlined_call_operand.hbm [shape: f32[32,32], index: 1, kind: input, shape index: {}]   ;;  %s342_s2 = inlined_call_operand.vmem [shape: f32[1,32], index: 2, kind: input, shape index: {}]   ;;  %s343_s3 = inlined_call_operand.hbm [shape: f32[16,32], index: 3, kind: output, shape index: {}]  }
   0x1   :  { %9 = vsyncpa [#allocation6], 0 }
   0x2   :  { %10 = vsyncpa [#allocation4], 0  ;;  %s263_s12 = smov [#allocation2]   ;;  %s191_s16 = scalar_lea.hbm %s340_s0, 256 }
   0x3   :  { %s16_s13 = sshll.u32 %s263_s12, 4  ;;  %p192_p0 = scmp.ne.s32.totalorder %s340_s0, %s191_s16  ;;  %s17_s13 = int_to_ptr.vmem [resolvable:$true] %s16_s13 }
   0x4   :  { %p195_p1 = scmp.lt.u32.totalorder %s191_s16, %s340_s0 }
   0x6   :  { %p197_p2 = pnand %p195_p1, %p192_p0 }
   0x8   :  { %200 = shalt.err (!%p197_p2)
}
   0x9   :  { %s201_s21 = scalar_lea.vmem %s17_s13, 256  ;;  %p206_p4 = scmp.lt.s32.totalorder %s17_s13, %s17_s13 }
   0xa   :  { %p202_p3 = scmp.ne.s32.totalorder %s17_s13, %s201_s21  ;;  %p207_p5 = scmp.lt.s32.totalorder %s201_s21, %s201_s21 }
   0xc   :  { %p208_p6 = por %p207_p5, %p206_p4 }
   0xe   :  { %p209_p7 = pnand %p208_p6, %p202_p3 }
  0x10   :  { %212 = shalt.err (!%p209_p7)
}
  0x11   :  { %s264_s22 = smov 128   ;;  %s265_s23 = smov 8  }
  0x12   :  { %22 = dma.hbm_to_vmem [thread:$0]  %s340_s0, 256, %s17_s13, [#allocation3], %s264_s22, %s264_s22, %s265_s23  }
  0x13   :  { %s266_s26 = smov [#allocation5]   ;;  %s213_s30 = scalar_lea.hbm %s341_s1, 512 }
  0x14   :  { %s28_s27 = sshll.u32 %s266_s26, 4  ;;  %p214_p8 = scmp.ne.s32.totalorder %s341_s1, %s213_s30  ;;  %s29_s27 = int_to_ptr.vmem [resolvable:$true] %s28_s27 }
  0x15   :  { %p217_p9 = scmp.lt.u32.totalorder %s213_s30, %s341_s1 }
  0x17   :  { %p219_p10 = pnand %p217_p9, %p214_p8 }
  0x19   :  { %222 = shalt.err (!%p219_p10)
}
  0x1a   :  { %s223_s8 = scalar_lea.vmem %s29_s27, 512  ;;  %p228_p12 = scmp.lt.s32.totalorder %s29_s27, %s29_s27 }
  0x1b   :  { %p224_p11 = scmp.ne.s32.totalorder %s29_s27, %s223_s8  ;;  %p229_p13 = scmp.lt.s32.totalorder %s223_s8, %s223_s8 }
  0x1d   :  { %p230_p0 = por %p229_p13, %p228_p12 }
  0x1f   :  { %p231_p1 = pnand %p230_p0, %p224_p11 }
  0x21   :  { %234 = shalt.err (!%p231_p1)
}
  0x22   :  { %34 = dma.hbm_to_vmem [thread:$0]  %s341_s1, 512, %s29_s27, [#allocation6], %s264_s22, %s264_s22, %s265_s23  }
  0x23   :  { %257 = dma.done.wait [#allocation3], 256  }
  0x24   :  { %258 = vsyncadd [#allocation3], 4294967040 }
  0x25   :  { %259 = dma.done.wait [#allocation6], 512  }
  0x26   :  { %260 = vsyncadd [#allocation6], 4294966784  ;;  %vm56_vm0 = vcmask 261120   ;;  %v45_v0 = vld [vmem:[#allocation5] sm:$0xff]  ;;  %v46_v1 = vld [vmem:[#allocation5 + $0x8] sm:$0xff]  ;;  %s267_s11 = smov [#allocation7]  }
  0x27   :  { %v47_v2 = vld [vmem:[#allocation5 + $0x10] sm:$0xff]  ;;  %v178_v3 = vpack.c.bf16 %v46_v1, %v45_v0  ;;  %v48_v4 = vld [vmem:[#allocation5 + $0x18] sm:$0xff]  ;;  %s145_s12 = sshll.u32 %s267_s11, 4  ;;  %s146_s12 = int_to_ptr.vmem [resolvable:$true] %s145_s12 }
  0x28   :  { %v43_v5 = vld [vmem:[#allocation2] sm:$0xff]  ;;  %v182_v6 = vpack.c.bf16 %v48_v4, %v47_v2  ;;  %v44_v7 = vld [vmem:[#allocation2 + $0x8] sm:$0xff]  ;;  %s235_s13 = scalar_lea.vmem %s146_s12, 256  ;;  %p240_p3 = scmp.lt.s32.totalorder %s146_s12, %s146_s12 }
  0x29   :  { %175 = vmatprep.mubr.msk.f32.mxu0 %vm56_vm0, %v43_v5  ;;  %179 = vmatprep.subr.bf16.mxu0 %v178_v3  ;;  %v158_v8 = vld [vmem:[%s342_s2] ss:$0 sm:$0xff]  ;;  %p236_p2 = scmp.ne.s32.totalorder %s146_s12, %s235_s13  ;;  %p241_p4 = scmp.lt.s32.totalorder %s235_s13, %s235_s13 }
  0x2a   :  { %181 = vmatpush3.bf16.msra.mxu0 %v178_v3 }
  0x2b   :  { %183 = vmatprep.subr.bf16.mxu0 %v182_v6  ;;  %p242_p5 = por %p241_p4, %p240_p3 }
  0x2d   :  { %p243_p6 = pnand %p242_p5, %p236_p2 }
  0x2e   :  { %185 = vmatpush3.bf16.msra.mxu0 %v182_v6 }
  0x31   :  { %176 = vmatmul.mubr.msk.f32.vlgmr.msra.gmra.mrb[0].mxu0 %vm56_vm0, %v44_v7 }
 0x104   :  { %v177_v9 = vpop.f32.mrb[0].mxu0 }
 0x105   :  { %v135_v10 = vadd.f32 %v177_v9, %v158_v8  ;;  %v129_v11 = vpop.f32.mrb[1].mxu0 }
 0x106   :  { %v130_v12 = vadd.f32 %v158_v8, %v129_v11 }
 0x107   :  { %139 = vst.msk [vmem:[#allocation7 + $0x8] sm:$0xff] %vm56_vm0, %v135_v10 }
 0x108   :  { %138 = vst.msk [vmem:[#allocation7] sm:$0xff] %vm56_vm0, %v130_v12 }
 0x109   :  { %246 = shalt.err (!%p243_p6)
}
 0x10a   :  { %s247_s15 = scalar_lea.hbm %s343_s3, 256 }
 0x10b   :  { %p248_p7 = scmp.ne.s32.totalorder %s343_s3, %s247_s15  ;;  %p251_p8 = scmp.lt.u32.totalorder %s247_s15, %s343_s3 }
 0x10d   :  { %p253_p9 = pnand %p251_p8, %p248_p7 }
 0x10f   :  { %256 = shalt.err (!%p253_p9)
}
 0x110   :  { %151 = dma.vmem_to_hbm [thread:$0]  %s146_s12, 256, %s343_s3, [#allocation4], %s264_s22, %s264_s22, %s265_s23  }
 0x111   :  { %261 = dma.done.wait [#allocation4], 256  }
 0x112   :  { %262 = vsyncadd [#allocation4], 4294967040 }
 0x113   :  { %155 = vsyncpa [#allocation3], 1 }
 0x114   :  { %156 = vsyncpa [#allocation6], 1 }
 0x115   :  { %157 = vsyncpa [#allocation4], 1 }

</bundles_post_ra>
